<compile_context>
chip_gen: v7x
topology: tpu7x:2x2x1
jax: 0.10.0
libtpu: 0.0.40
codegen_flags: <defaults>
</compile_context>

<pallas_src>
import functools

import jax
import jax.numpy as jnp
from jax.experimental import pallas as pl
from jax.experimental.pallas import tpu as pltpu


def _soft_pos_kernel(x_ref, ws_ref, wo_ref, o_ref, *, t_tile, inv_tm1):
    # x_ref:  (H, tT)  tile of x in the original (B, C, T) layout (batch squeezed)
    # ws_ref: (1, H)   w_scale = weight[0] - weight[1]
    # wo_ref: (1, H)   w_off   = weight[1] + bias
    # o_ref:  (tT, H)  tile of the (B, T, H) output (batch squeezed)
    t0 = pl.program_id(1) * t_tile                                   # global T offset
    t_idx = jax.lax.broadcasted_iota(jnp.int32, (t_tile, 1), 0) + t0
    lin = t_idx.astype(jnp.float32) * jnp.float32(inv_tm1)           # (tT, 1) slice of linspace(0,1,T)

    # Linear(2 -> H) on [lin, 1-lin], algebraically folded to one FMA on the VPU.
    pos = lin * ws_ref[...] + wo_ref[...]                            # (tT, H) f32

    # Fused 'b c t -> b t c' transpose (XLU slot, otherwise idle on this kernel).
    x_th = jnp.transpose(x_ref[...])                                 # (tT, H)
    o_ref[...] = (x_th.astype(jnp.float32) + pos).astype(o_ref.dtype)


def _pick_t_tile(T, H, B, *, dtype_bytes=4):
    """VMEM-aware T tile.

    Budget ~5 MiB per block so 2 x-blocks + 2 out-blocks (double buffered) stay
    <= ~20 MiB: fits v7x's 32 MiB scoped default with headroom, and keeps each
    block >= ~1 MiB for typical H so per-step overhead is amortized.
    """
    vmem_per_buf = 5 * 1024 * 1024
    max_tt = max(1, vmem_per_buf // (dtype_bytes * H))
    tt = min(4096, max_tt)                       # diminishing returns past ~4K rows
    tt = max(128, (tt // 128) * 128)             # keep (8,128) alignment both layouts
    if tt >= T:
        tt = T                                   # full extent is always a legal block
    # v7x has 2 TensorCores: make sure there are >= 2 grid points when feasible.
    if B * pl.cdiv(T, tt) < 2 and T >= 256:
        tt = max(128, (((T + 1) // 2) // 128) * 128)
    return tt


def soft_position_embed(x_bct, weight_2h, bias_h):
    """SoftPositionEmbed forward.

    x_bct:     (B, C, T) float32, C == hidden_size  ('b c t' torch layout)
    weight_2h: (2, H)  == torch Linear(2, H).weight.T
    bias_h:    (H,)    == torch Linear(2, H).bias
    Returns (B, T, H), matching `rearrange(x, 'b c t -> b t c') + pos`.
    """
    B, H, T = x_bct.shape
    t_tile = _pick_t_tile(T, H, B, dtype_bytes=x_bct.dtype.itemsize)
    n_t = pl.cdiv(T, t_tile)
    inv_tm1 = 0.0 if T == 1 else 1.0 / (T - 1)   # torch.linspace(0,1,1) == [0.]

    # Fold the 2-input linear into one FMA: lin*w0 + (1-lin)*w1 + b
    #                                     = lin*(w0-w1) + (w1+b).
    w_scale = (weight_2h[0] - weight_2h[1]).astype(jnp.float32).reshape(1, H)
    w_off = (weight_2h[1] + bias_h).astype(jnp.float32).reshape(1, H)

    kernel = functools.partial(_soft_pos_kernel, t_tile=t_tile, inv_tm1=inv_tm1)

    return pl.pallas_call(
        kernel,
        out_shape=jax.ShapeDtypeStruct((B, T, H), x_bct.dtype),
        grid_spec=pltpu.PrefetchScalarGridSpec(
            num_scalar_prefetch=0,
            grid=(B, n_t),
            in_specs=[
                # x in its original (B, H, T) layout; transpose fused in-kernel.
                pl.BlockSpec((pl.Squeezed(), H, t_tile), lambda b, t: (b, 0, t)),
                pl.BlockSpec((1, H), lambda b, t: (0, 0)),   # w_scale (tiny)
                pl.BlockSpec((1, H), lambda b, t: (0, 0)),   # w_off   (tiny)
            ],
            out_specs=pl.BlockSpec((pl.Squeezed(), t_tile, H),
                                   lambda b, t: (b, t, 0)),
        ),
        compiler_params=pltpu.CompilerParams(
            # Both axes independent -> megacore sharding on v7x.
            dimension_semantics=("parallel", "parallel"),
            # Working set is budgeted <= ~20 MiB above, so 32 MiB is safe on all of
            # v5e / v6e (128 MiB physical) and v7x (64 MiB physical, 32 MiB scoped).
            vmem_limit_bytes=32 * 1024 * 1024,
        ),
    )(x_bct, w_scale, w_off)


def _reference(x_bct, weight_2h, bias_h):
    T = x_bct.shape[-1]
    lin = jnp.linspace(0.0, 1.0, num=T, dtype=jnp.float32)[:, None]
    grid_feat = jnp.concatenate([lin, 1.0 - lin], axis=-1)           # (T, 2)
    pos = grid_feat @ weight_2h + bias_h[None, :]                    # (T, H)
    return jnp.transpose(x_bct, (0, 2, 1)) + pos[None, :, :]


def _run_case(B, H, T, key):
    kx, kw, kb = jax.random.split(key, 3)
    x = jax.random.normal(kx, (B, H, T), dtype=jnp.float32)          # 'b c t'
    weight = jax.random.normal(kw, (2, H), dtype=jnp.float32) * 0.1
    bias = jax.random.normal(kb, (H,), dtype=jnp.float32) * 0.1

    out = jax.block_until_ready(soft_position_embed(x, weight, bias))
    ref = _reference(x, weight, bias)

    assert out.shape == (B, T, H), (out.shape, (B, T, H))
    assert jnp.allclose(out, ref, atol=1e-5, rtol=1e-5), ("mismatch", B, H, T)


if __name__ == "__main__":
    key = jax.random.PRNGKey(0)

    # Small shape consistent with the module's forward: (b, c, t) = (2, 32, 16).
    _run_case(2, 32, 16, jax.random.fold_in(key, 0))
    # Multi-tile path: exercises the grid loop, iota T offsets and VMEM budgeting.
    _run_case(2, 256, 8192, jax.random.fold_in(key, 1))
    # B=1 path: exercises the >=2-grid-point split for v7x's two TensorCores.
    _run_case(1, 64, 512, jax.random.fold_in(key, 2))

    print("KERNEL_OK")
</pallas_src>

<mosaic_0001>
module attributes {stable_mosaic.version = 11 : i64} {
  func.func @_soft_pos_kernel(%arg0: i32, %arg1: i32, %arg2: memref<1x32x16xf32, #tpu.memory_space<vmem>>, %arg3: memref<1x32xf32, #tpu.memory_space<vmem>>, %arg4: memref<1x32xf32, #tpu.memory_space<vmem>>, %arg5: memref<1x16x32xf32, #tpu.memory_space<vmem>>) attributes {dimension_semantics = [#tpu.dimension_semantics<parallel>, #tpu.dimension_semantics<parallel>], iteration_bounds = array<i64: 2, 1>, scalar_prefetch = 0 : i64, scratch_operands = 0 : i64, tpu.core_type = #tpu.core_type<tc>, window_params = [{transform_indices = @transform_0, window_bounds = array<i64: 1, 32, 16>}, {pipeline_mode = #tpu.pipeline_mode<synchronous>, transform_indices = @transform_1, window_bounds = array<i64: 1, 32>}, {pipeline_mode = #tpu.pipeline_mode<synchronous>, transform_indices = @transform_2, window_bounds = array<i64: 1, 32>}, {transform_indices = @transform_3, window_bounds = array<i64: 1, 16, 32>}]} {
    %c16_i32 = arith.constant 16 : i32
    %0 = arith.muli %arg1, %c16_i32 : i32
    %1 = tpu.iota {dimensions = array<i32: 0>} : vector<16x1xi32>
    %2 = vector.broadcast %0 : i32 to vector<16x1xi32>
    %3 = arith.addi %1, %2 : vector<16x1xi32>
    %4 = arith.sitofp %3 : vector<16x1xi32> to vector<16x1xf32>
    %cst = arith.constant 0.0666666701 : f32
    %5 = vector.broadcast %cst : f32 to vector<16x1xf32>
    %6 = arith.mulf %4, %5 : vector<16x1xf32>
    %c0 = arith.constant 0 : index
    %c0_0 = arith.constant 0 : index
    %7 = vector.load %arg3[%c0, %c0_0] : memref<1x32xf32, #tpu.memory_space<vmem>>, vector<1x32xf32>
    %8 = vector.broadcast %6 : vector<16x1xf32> to vector<16x32xf32>
    %9 = vector.broadcast %7 : vector<1x32xf32> to vector<16x32xf32>
    %10 = arith.mulf %8, %9 : vector<16x32xf32>
    %c0_1 = arith.constant 0 : index
    %c0_2 = arith.constant 0 : index
    %11 = vector.load %arg4[%c0_1, %c0_2] : memref<1x32xf32, #tpu.memory_space<vmem>>, vector<1x32xf32>
    %12 = vector.broadcast %11 : vector<1x32xf32> to vector<16x32xf32>
    %13 = arith.addf %10, %12 : vector<16x32xf32>
    %c0_3 = arith.constant 0 : index
    %c0_4 = arith.constant 0 : index
    %c0_5 = arith.constant 0 : index
    %14 = vector.load %arg2[%c0_3, %c0_4, %c0_5] : memref<1x32x16xf32, #tpu.memory_space<vmem>>, vector<1x32x16xf32>
    %15 = vector.shape_cast %14 : vector<1x32x16xf32> to vector<32x16xf32>
    %16 = tpu.transpose %15, [1, 0] : vector<32x16xf32> -> vector<16x32xf32>
    %17 = arith.addf %16, %13 : vector<16x32xf32>
    %c0_6 = arith.constant 0 : index
    %c0_7 = arith.constant 0 : index
    %c0_8 = arith.constant 0 : index
    %18 = vector.load %arg5[%c0_6, %c0_7, %c0_8] : memref<1x16x32xf32, #tpu.memory_space<vmem>>, vector<1x16x32xf32>
    %19 = vector.shape_cast %18 : vector<1x16x32xf32> to vector<16x32xf32>
    %20 = vector.shape_cast %17 : vector<16x32xf32> to vector<1x16x32xf32>
    tpu.vector_store %arg5[%c0_6, %c0_7, %c0_8], %20 {strides = array<i32>} : memref<1x16x32xf32, #tpu.memory_space<vmem>>, vector<1x16x32xf32>,
    return
  }
  func.func @transform_0(%arg0: i32, %arg1: i32) -> (i32, i32, i32) {
    %c0_i32 = arith.constant 0 : i32
    %c0_i32_0 = arith.constant 0 : i32
    return %arg0, %c0_i32, %arg1 : i32, i32, i32
  }
  func.func @transform_1(%arg0: i32, %arg1: i32) -> (i32, i32) {
    %c0_i32 = arith.constant 0 : i32
    %c0_i32_0 = arith.constant 0 : i32
    %c0_i32_1 = arith.constant 0 : i32
    return %c0_i32, %c0_i32_0 : i32, i32
  }
  func.func @transform_2(%arg0: i32, %arg1: i32) -> (i32, i32) {
    %c0_i32 = arith.constant 0 : i32
    %c0_i32_0 = arith.constant 0 : i32
    %c0_i32_1 = arith.constant 0 : i32
    return %c0_i32, %c0_i32_0 : i32, i32
  }
  func.func @transform_3(%arg0: i32, %arg1: i32) -> (i32, i32, i32) {
    %c0_i32 = arith.constant 0 : i32
    %c0_i32_0 = arith.constant 0 : i32
    return %arg0, %arg1, %c0_i32 : i32, i32, i32
  }
}

</mosaic_0001>

<bundles_post_ra>
// kernel: tpu_custom_call.1
= control target key start
LH: loop header
LB: loop body
LE: loop exit
PB: predicated region body
PF: predicated region fallthrough
CT: control target
= control target key end

     0   :  { %8 = vsyncpa [#allocation3], 0  ;;  %s659_s0 = inlined_call_operand.vmem [shape: f32[2,32,16], index: 0, kind: input, shape index: {}]   ;;  %s660_s1 = inlined_call_operand.vmem [shape: f32[1,32], index: 1, kind: input, shape index: {}]   ;;  %s661_s2 = inlined_call_operand.vmem [shape: f32[1,32], index: 2, kind: input, shape index: {}]   ;;  %s662_s3 = inlined_call_operand.hbm [shape: f32[2,16,32], index: 3, kind: output, shape index: {}]  }
   0x1   :  { %10 = vsyncpa [#allocation3 + $0x1], 0  ;;  %s538_s12 = smov 0   ;;  %s540_s13 = smov 0  }
   0x2   :  { %s542_s14 = smov 0   ;;  %s544_s15 = smov 0  }
   0x3   :  { %s546_s16 = smov 0   ;;  %s548_s17 = smov 0  }
   0x4 LB: > { %s360_s18 = sadd.s32 4294967295, %s513_s17   ;;  %s361_s19 = sadd.s32 4294967294, %s513_s17   ;;  %s513_s17 = sphi %s548_s17, %s16_s17   ;;  %s509_s16 = sphi %s546_s16, %s669_s16   ;;  %s505_s15 = sphi %s544_s15, %s668_s15   ;;  %s501_s14 = sphi %s542_s14, %s667_s14   ;;  %s497_s13 = sphi %s540_s13, %s666_s13   ;;  %s493_s12 = sphi %s538_s12, %s665_s12  }
   0x5   : > { %s28_s20 = sadd.s32 1, %s509_s16  ;;  %s107_s21 = sadd.s32 1, %s501_s14 }
   0x6   : > { %p30_p0 = scmp.ge.s32.totalorder %s28_s20, 2  ;;  %p117_p1 = scmp.ne.s32.totalorder %s501_s14, %s497_s13 }
   0x7   : > { %p118_p2 = scmp.eq.s32.totalorder %s360_s18, 1  ;;  %p123_p3 = scmp.ne.s32.totalorder %s497_s13, %s493_s12 }
   0x8   : > { %s671_s20 = smov (%p30_p0, %s28_s20), 0  ;;  %p124_p5 = scmp.eq.s32.totalorder %s361_s19, 1 }
   0x9   : > { %p578_p4 = por %p118_p2, %p117_p1  ;;  %s102_s23 = ssub.s32 %s509_s16, %s671_s20 }
   0xa   : > { %p364_p6 = scmp.ge.s32.totalorder %s513_s17, 1  ;;  %p105_p7 = scmp.eq.s32.totalorder %s102_s23, 0 }
   0xb   : > { %p585_p8 = por %p124_p5, %p123_p3  ;;  %p159_p9 = scmp.lt.s32.totalorder %s513_s17, 3 }
   0xc   : > { %s591_s25 = scalar_select %p105_p7, %s501_s14, %s107_s21  }
   0xd   : > { %p160_p10 = pnand %p364_p6, %p159_p9 }
   0xe   : > { %p186_p11 = scmp.lt.s32.totalorder (!%p160_p10), %s505_s15, 1  ;;  %v196_v4 = vlaneseq (!%p160_p10)  ;;  %v368_v10 = vld [vmem:[%s660_s1] ss:$0 sm:$0xff] (!%p160_p10)  ;;  %s183_s8 = sand.u32 (!%p160_p10), 1, %s497_s13   ;;  %vm262_vm0 = vcmask (!%p160_p10), 261120  }
   0xf   : > { %163 = sbr.rel (%p160_p10) target bundleno = 177 (0xb1), region = 32  ;;  %v369_v13 = vld [vmem:[%s661_s2] ss:$0 sm:$0xff] (!%p160_p10)  ;;  %s365_s9 = sshll.u32 (!%p160_p10), %s183_s8, 4 }
  0x10   : > { %v197_v5 = vshrl.u32 (!%p160_p10), %v196_v4, 7  ;;  %s185_s10 = scalar_lea.vmem (!%p160_p10), [#allocation2], %s365_s9  ;;  %s376_s18 = sshll.u32 (!%p160_p10), %s505_s15, 8 }
  0x11   : > { %s281_s11 = sshll.u32 (!%p160_p10), %s185_s10, 4  ;;  %s611_s23 = scalar_lea.hbm (!%p160_p10), %s662_s3, %s376_s18  ;;  %s606_s11 = int_to_ptr.vmem [resolvable:$true] %s281_s11 }
  0x12   : > { %v202_v6 = vcvt.s32.f32 (!%p160_p10), %v197_v5  ;;  %v198_v7 = vadd.s32 (!%p160_p10), 8, %v197_v5 }
  0x14   : > { %v204_v8 = vmul.f32 (!%p160_p10), 0.06666667, %v202_v6  ;;  %v203_v9 = vcvt.s32.f32 (!%p160_p10), %v198_v7 }
  0x16   : > { %s187_s26 = scalar_select %p186_p11, %s505_s15, 1  ;;  %v213_v11 = vmul.f32 %v368_v10, %v204_v8  ;;  %v205_v12 = vmul.f32 0.06666667, %v203_v9 }
  0x17   : > { %s515_s15 = smov [#allocation2]  }
  0x18   : > { %s375_s27 = sshll.u32 %s187_s26, 5  ;;  %v222_v14 = vadd.f32 %v369_v13, %v213_v11  ;;  %v214_v15 = vmul.f32 %v368_v10, %v205_v12  ;;  %s613_s26 = scalar_lea.sflag [#allocation3], %s183_s8 }
  0x19   : > { %s193_s30 = scalar_lea.vmem %s659_s0, %s375_s27  ;;  %s435_s27 = scalar_lea.vmem %s606_s11, 256 }
  0x1a   : > { %v224_v0 = vld [vmem:[%s193_s30] sm:$0xff]  ;;  %v225_v1 = vld [vmem:[%s193_s30 + $0x8] sm:$0xff]  ;;  %v226_v2 = vld [vmem:[%s193_s30 + $0x10] sm:$0xff]  ;;  %v223_v18 = vadd.f32 %v369_v13, %v214_v15  ;;  %p436_p12 = scmp.ne.s32.totalorder %s606_s11, %s435_s27  ;;  %s439_s28 = sshll.u32 %s515_s15, 4  ;;  %s440_s28 = int_to_ptr.vmem [resolvable:$false] %s439_s28 }
  0x1b   : > { %228 = vxpose.xlu0.b32.start [1/4] (short) (narrow) %v224_v0, 16  ;;  %v227_v3 = vld [vmem:[%s193_s30 + $0x18] sm:$0xff]  ;;  %s441_s29 = scalar_lea.vmem %s440_s28, 512  ;;  %p442_p1 = scmp.lt.s32.totalorder %s606_s11, %s440_s28 }
  0x1c   : > { %p437_p13 = pnand %p436_p12, %p578_p4  ;;  %p443_p2 = scmp.lt.s32.totalorder %s441_s29, %s435_s27 }
  0x1e   : > { %p438_p0 = pneg %p437_p13  ;;  %p444_p3 = por %p443_p2, %p442_p1 }
  0x1f   : > { %229 = vxpose.xlu0.b32.cont [2/4] (short) (narrow) %v225_v1, 16 }
  0x20   : > { %p445_p5 = pnand %p444_p3, %p438_p0 }
  0x23   : > { %230 = vxpose.xlu0.b32.cont [3/4] (short) (narrow) %v226_v2, 16 }
  0x27   : > { %231 = vxpose.xlu0.b32.end [4/4] (short) (narrow) %v227_v3, 16 }
  0x9b   : > { %v244_v16 = vpop.trf.xlu0 }
  0x9c   : > { %v260_v17 = vadd.f32 %v244_v16, %v222_v14 }
  0x9e   : > { %263 = vst.msk [vmem:[%s185_s10] sm:$0xff] %vm262_vm0, %v260_v17 }
  0x9f   : > { %v245_v19 = vpop.trf.xlu0 }
  0xa0   : > { %v261_v20 = vadd.f32 %v245_v19, %v223_v18 }
  0xa2   : > { %264 = vst.msk [vmem:[%s185_s10 + $0x8] sm:$0xff] %vm262_vm0, %v261_v20 }
  0xa3   : > { %448 = shalt.err (!%p445_p5)
}
  0xa4   : > { %s449_s30 = scalar_lea.hbm %s611_s23, 256  ;;  %s453_s6 = scalar_lea.hbm %s662_s3, 512 }
  0xa5   : > { %p450_p6 = scmp.ne.s32.totalorder %s611_s23, %s449_s30  ;;  %p454_p10 = scmp.lt.u32.totalorder %s611_s23, %s662_s3 }
  0xa6   : > { %p455_p11 = scmp.lt.u32.totalorder %s453_s6, %s449_s30  ;;  %p457_p13 = scmp.lt.u32.totalorder %s449_s30, %s611_s23 }
  0xa7   : > { %p451_p7 = pnand %p450_p6, %p578_p4 }
  0xa8   : > { %p456_p12 = por %p455_p11, %p454_p10 }
  0xa9   : > { %p452_p9 = pneg %p451_p7 }
  0xaa   : > { %p458_p0 = por %p457_p13, %p456_p12 }
  0xac   : > { %p459_p1 = pnand %p458_p0, %p452_p9 }
  0xae   : > { %462 = shalt.err (!%p459_p1)
}
  0xaf   : > { %s516_s9 = smov 128   ;;  %s517_s10 = smov 8  }
  0xb0   : > { %377 = dma.vmem_to_hbm [thread:$0]  (%p578_p4), %s606_s11, 256, %s611_s23, %s613_s26, %s516_s9, %s516_s9, %s517_s10  }
  0xb1 PF: > { %p383_p2 = scmp.ge.s32.totalorder %s513_s17, 2  ;;  %s296_s18 = sand.u32 1, %s493_s12  }
  0xb2   : > { %s297_s19 = scalar_lea.sflag [#allocation3], %s296_s18 }
  0xb3   : > { %p380_p3 = pnand %p383_p2, %p585_p8 }
  0xb5   : > { %488 = dma.done.wait (!%p380_p3), %s297_s19, 256  }
  0xb6   : > { %490 = vsyncadd (!%p380_p3), %s297_s19, 4294967040  ;;  %s16_s17 = sadd.s32 1, %s513_s17   ;;  %s665_s12 = smov %s497_s13 }
  0xb7   : > { %p13_p5 = scmp.ge.s32.totalorder %s16_s17, 4   ;;  %s666_s13 = smov %s501_s14 }
  0xb8   : > { %s667_s14 = smov %s591_s25  ;;  %s668_s15 = smov %s509_s16 }
  0xb9   : > { %s669_s16 = smov %s671_s20  ;;  %15 = sbr.rel (!%p13_p5) target bundleno = 4 (0x4), region = 67 }
  0xc0   :  { %302 = vsyncpa [#allocation3], 1 }
  0xc1   :  { %304 = vsyncpa [#allocation3 + $0x1], 1 }

</bundles_post_ra>
